<compile_context>
chip_gen: v5e
topology: v5e:2x2
jax: 0.10.0
libtpu: 0.0.40
codegen_flags: <defaults>
</compile_context>

<pallas_src>
import numpy as np
import jax
import jax.numpy as jnp
from jax.experimental import pallas as pl
from jax.experimental.pallas import tpu as pltpu

# Model dims (small, synthetic — consistent with a tiny cancerrisknet encoder)
B = 2       # batch
S = 8       # sequence length
H = 32      # hidden size
F = 64      # FFN hidden size
C = 5       # number of risk outputs (followup horizons)
BS = B * S  # fused batch*seq rows

# Row offsets inside the packed weight slab (w_slab).
_QKVO = 0            # rows [0, H)        : [Wqk | Wvo]            (H, 2H)
_W1 = H              # rows [H, 2H)       : w1                      (H, F)
_MASK = 2 * H        # rows [2H, 2H+BS)   : additive attn mask      (BS, BS)
_POOL = 2 * H + BS   # rows [.., .. + B)  : per-batch mean-pool mat (B, BS)
W_SLAB_ROWS = 2 * H + BS + B          # 82
W_SLAB_COLS = max(2 * H, F)           # 64


def _attribution_kernel(h_ref, w_ref, head_ref, out_ref):
    h = h_ref[...]                                                   # (BS, H)

    # --- fused folded projections: one MXU launch -> [h@Wqk | h@Wvo] ---
    proj = jnp.dot(h, w_ref[_QKVO:_QKVO + H, :2 * H],
                   preferred_element_type=jnp.float32)               # (BS, 2H)
    qk = proj[:, :H]                                                 # h @ Wqk
    vo = proj[:, H:]                                                 # h @ Wvo

    # --- attention scores: (h @ Wqk) @ h.T, scale pre-folded, no transpose ---
    s = jax.lax.dot_general(qk, h,
                            dimension_numbers=(((1,), (1,)), ((), ())),
                            preferred_element_type=jnp.float32)      # (BS, BS)
    # Block-diagonal additive mask (0 / -1e30) baked into the weight slab.
    s = s + w_ref[_MASK:_MASK + BS, :BS]

    # --- stabilized softmax, exact divide (attribution parity) ---
    s = s - jnp.max(s, axis=-1, keepdims=True)
    e = jnp.exp(s)
    p = e / jnp.sum(e, axis=-1, keepdims=True)

    # --- attention output (value+output projections folded) + residual ---
    h1 = h + jnp.dot(p, vo, preferred_element_type=jnp.float32)      # (BS, H)

    # --- FFN up-projection + relu ---
    f = jnp.maximum(
        jnp.dot(h1, w_ref[_W1:_W1 + H, :F],
                preferred_element_type=jnp.float32), 0.0)            # (BS, F)

    # --- per-batch mean pooling over the sequence as tiny MXU matmuls ---
    pool = w_ref[_POOL:_POOL + B, :BS]                               # (B, BS)
    ph1 = jnp.dot(pool, h1, preferred_element_type=jnp.float32)      # (B, H)
    pf = jnp.dot(pool, f, preferred_element_type=jnp.float32)        # (B, F)

    # --- risk head with folded FFN tail: ph1@wout + pf@(w2@wout) + bout ---
    out_ref[...] = (
        jnp.dot(ph1, head_ref[:H, :], preferred_element_type=jnp.float32)
        + jnp.dot(pf, head_ref[H:H + F, :], preferred_element_type=jnp.float32)
        + head_ref[H + F:, :])                                       # (B, C)


def sinusoidal_embed(seq, hidden):
    """seq: (B, S) float -> (B, S, hidden) sinusoidal positional embedding."""
    half = hidden // 2
    freqs = jnp.exp(-jnp.arange(half, dtype=jnp.float32)
                    * (jnp.log(10000.0) / half))
    ang = seq.astype(jnp.float32)[..., None] * freqs                 # (B, S, half)
    # TODO(synk): cancerrisknet may interleave sin/cos per frequency pair
    # instead of [sin|cos] halves; verify layout against reference weights.
    return jnp.concatenate([jnp.sin(ang), jnp.cos(ang)], axis=-1)


def init_params(key):
    ks = jax.random.split(key, 7)
    sc = 1.0 / jnp.sqrt(jnp.float32(H))
    return {
        "wq":   jax.random.normal(ks[0], (H, H), jnp.float32) * sc,
        "wk":   jax.random.normal(ks[1], (H, H), jnp.float32) * sc,
        "wv":   jax.random.normal(ks[2], (H, H), jnp.float32) * sc,
        "wo":   jax.random.normal(ks[3], (H, H), jnp.float32) * sc,
        "w1":   jax.random.normal(ks[4], (H, F), jnp.float32) * sc,
        "w2":   jax.random.normal(ks[5], (F, H), jnp.float32)
                / jnp.sqrt(jnp.float32(F)),
        "wout": jax.random.normal(ks[6], (H, C), jnp.float32) * sc,
        "bout": jnp.zeros((1, C), jnp.float32),
    }


def pack_params(p):
    """One-time algebraic folding + packing into two kernel inputs."""
    attn_scale = 1.0 / np.sqrt(np.float32(H))
    wqk = (p["wq"] * attn_scale) @ p["wk"].T          # (H, H)
    wvo = p["wv"] @ p["wo"]                           # (H, H)
    w2out = p["w2"] @ p["wout"]                       # (F, C)

    # Trace-time numpy constants: block-diagonal additive mask and pool matrix.
    rows = np.arange(BS)
    mask = np.where((rows[:, None] // S) == (rows[None, :] // S),
                    0.0, -1e30).astype(np.float32)                   # (BS, BS)
    pool = np.where((rows[None, :] // S) == np.arange(B)[:, None],
                    1.0 / S, 0.0).astype(np.float32)                 # (B, BS)

    w_slab = jnp.zeros((W_SLAB_ROWS, W_SLAB_COLS), jnp.float32)
    w_slab = w_slab.at[_QKVO:_QKVO + H, :H].set(wqk)
    w_slab = w_slab.at[_QKVO:_QKVO + H, H:2 * H].set(wvo)
    w_slab = w_slab.at[_W1:_W1 + H, :F].set(p["w1"])
    w_slab = w_slab.at[_MASK:_MASK + BS, :BS].set(jnp.asarray(mask))
    w_slab = w_slab.at[_POOL:_POOL + B, :BS].set(jnp.asarray(pool))

    head_slab = jnp.concatenate([p["wout"], w2out, p["bout"]], axis=0)  # (H+F+1, C)
    return w_slab, head_slab


def _run_pallas(h2d, w_slab, head_slab):
    vmem = lambda: pl.BlockSpec(memory_space=pltpu.MemorySpace.VMEM)
    return pl.pallas_call(
        _attribution_kernel,
        out_shape=jax.ShapeDtypeStruct((B, C), jnp.float32),
        in_specs=[vmem(), vmem(), vmem()],
        out_specs=vmem(),
    )(h2d, w_slab, head_slab)


@jax.jit
def _forward(x, age_seq, time_seq, w_slab, head_slab):
    # Fuse the three activation streams into one (B*S, H) slab before the
    # kernel: a single XLA add chain, 3x less activation HBM->VMEM traffic.
    age_emb = sinusoidal_embed(age_seq, H)
    time_emb = sinusoidal_embed(time_seq, H)
    h = (x + age_emb + time_emb).reshape(BS, H)
    return _run_pallas(h, w_slab, head_slab)                         # (B, C)


def attribution_forward(x, age_seq, time_seq, batch, w_slab, head_slab):
    """Mirrors AttributionModel.forward: stash age/time into batch, call model."""
    batch = dict(batch)
    batch["age_seq"] = age_seq
    batch["time_seq"] = time_seq
    return _forward(x, batch["age_seq"], batch["time_seq"], w_slab, head_slab)


if __name__ == "__main__":
    key = jax.random.PRNGKey(0)
    k_x, k_age, k_time, k_params = jax.random.split(key, 4)

    # x: embedded disease-code sequence (differentiable attribution target).
    x = jax.random.normal(k_x, (B, S, H), jnp.float32)
    # age_seq / time_seq: per-visit scalar ages / days (floats).
    age_seq = jax.random.uniform(k_age, (B, S), jnp.float32, 20.0, 80.0)
    time_seq = jax.random.uniform(k_time, (B, S), jnp.float32, 0.0, 365.0)
    batch = {}   # the wrapper fills in age_seq / time_seq

    params = init_params(k_params)
    w_slab, head_slab = pack_params(params)   # one-time fold + pack

    y = attribution_forward(x, age_seq, time_seq, batch, w_slab, head_slab)
    y = jax.block_until_ready(y)
    assert y.shape == (B, C) and y.dtype == jnp.float32
    assert bool(jnp.all(jnp.isfinite(y)))
    print("KERNEL_OK")
</pallas_src>

<mosaic_0001>
module attributes {stable_mosaic.version = 11 : i64} {
  func.func @_attribution_kernel(%arg0: memref<16x32xf32, #tpu.memory_space<vmem>>, %arg1: memref<82x64xf32, #tpu.memory_space<vmem>>, %arg2: memref<97x5xf32, #tpu.memory_space<vmem>>, %arg3: memref<2x5xf32, #tpu.memory_space<vmem>>) attributes {dimension_semantics = [], scalar_prefetch = 0 : i64, scratch_operands = 0 : i64, tpu.core_type = #tpu.core_type<tc>} {
    %c0 = arith.constant 0 : index
    %c0_0 = arith.constant 0 : index
    %0 = vector.load %arg0[%c0, %c0_0] : memref<16x32xf32, #tpu.memory_space<vmem>>, vector<16x32xf32>
    %c0_1 = arith.constant 0 : index
    %c0_2 = arith.constant 0 : index
    %1 = vector.load %arg1[%c0_1, %c0_2] : memref<82x64xf32, #tpu.memory_space<vmem>>, vector<32x64xf32>
    %cst = arith.constant dense<0.000000e+00> : vector<16x64xf32>
    %2 = tpu.matmul %0, %1, %cst {dimension_numbers = #tpu.dot_dimension_numbers<[1], [0], [0], [1], [0, 0, 1, 1], [], []>} : vector<16x32xf32>, vector<32x64xf32>, vector<16x64xf32> -> vector<16x64xf32>
    %3 = vector.extract_strided_slice %2 {offsets = [0, 0], sizes = [16, 32], strides = [1, 1]} : vector<16x64xf32> to vector<16x32xf32>
    %4 = vector.extract_strided_slice %2 {offsets = [0, 32], sizes = [16, 32], strides = [1, 1]} : vector<16x64xf32> to vector<16x32xf32>
    %cst_3 = arith.constant dense<0.000000e+00> : vector<16x16xf32>
    %5 = tpu.matmul %3, %0, %cst_3 {dimension_numbers = #tpu.dot_dimension_numbers<[1], [1], [0], [0], [0, 0, 1, 0], [], []>} : vector<16x32xf32>, vector<16x32xf32>, vector<16x16xf32> -> vector<16x16xf32>
    %c64 = arith.constant 64 : index
    %c0_4 = arith.constant 0 : index
    %6 = vector.load %arg1[%c64, %c0_4] : memref<82x64xf32, #tpu.memory_space<vmem>>, vector<16x16xf32>
    %7 = arith.addf %5, %6 : vector<16x16xf32>
    %cst_5 = arith.constant dense<0xFF800000> : vector<16xf32>
    %8 = vector.multi_reduction <maximumf>, %7, %cst_5 [1] : vector<16x16xf32> to vector<16xf32>
    %9 = vector.shape_cast %8 : vector<16xf32> to vector<16x1xf32>
    %10 = vector.broadcast %9 : vector<16x1xf32> to vector<16x16xf32>
    %11 = arith.subf %7, %10 : vector<16x16xf32>
    %12 = math.exp %11 : vector<16x16xf32>
    %cst_6 = arith.constant dense<0.000000e+00> : vector<16xf32>
    %13 = vector.multi_reduction <add>, %12, %cst_6 [1] : vector<16x16xf32> to vector<16xf32>
    %14 = vector.shape_cast %13 : vector<16xf32> to vector<16x1xf32>
    %15 = vector.broadcast %14 : vector<16x1xf32> to vector<16x16xf32>
    %16 = arith.divf %12, %15 : vector<16x16xf32>
    %cst_7 = arith.constant dense<0.000000e+00> : vector<16x32xf32>
    %17 = tpu.matmul %16, %4, %cst_7 {dimension_numbers = #tpu.dot_dimension_numbers<[1], [0], [0], [1], [0, 0, 1, 1], [], []>} : vector<16x16xf32>, vector<16x32xf32>, vector<16x32xf32> -> vector<16x32xf32>
    %18 = arith.addf %0, %17 : vector<16x32xf32>
    %c32 = arith.constant 32 : index
    %c0_8 = arith.constant 0 : index
    %19 = vector.load %arg1[%c32, %c0_8] : memref<82x64xf32, #tpu.memory_space<vmem>>, vector<32x64xf32>
    %cst_9 = arith.constant dense<0.000000e+00> : vector<16x64xf32>
    %20 = tpu.matmul %18, %19, %cst_9 {dimension_numbers = #tpu.dot_dimension_numbers<[1], [0], [0], [1], [0, 0, 1, 1], [], []>} : vector<16x32xf32>, vector<32x64xf32>, vector<16x64xf32> -> vector<16x64xf32>
    %cst_10 = arith.constant 0.000000e+00 : f32
    %21 = vector.broadcast %cst_10 : f32 to vector<16x64xf32>
    %22 = arith.maximumf %20, %21 : vector<16x64xf32>
    %c80 = arith.constant 80 : index
    %c0_11 = arith.constant 0 : index
    %23 = vector.load %arg1[%c80, %c0_11] : memref<82x64xf32, #tpu.memory_space<vmem>>, vector<2x16xf32>
    %cst_12 = arith.constant dense<0.000000e+00> : vector<2x32xf32>
    %24 = tpu.matmul %23, %18, %cst_12 {dimension_numbers = #tpu.dot_dimension_numbers<[1], [0], [0], [1], [0, 0, 1, 1], [], []>} : vector<2x16xf32>, vector<16x32xf32>, vector<2x32xf32> -> vector<2x32xf32>
    %cst_13 = arith.constant dense<0.000000e+00> : vector<2x64xf32>
    %25 = tpu.matmul %23, %22, %cst_13 {dimension_numbers = #tpu.dot_dimension_numbers<[1], [0], [0], [1], [0, 0, 1, 1], [], []>} : vector<2x16xf32>, vector<16x64xf32>, vector<2x64xf32> -> vector<2x64xf32>
    %c0_14 = arith.constant 0 : index
    %c0_15 = arith.constant 0 : index
    %26 = vector.load %arg2[%c0_14, %c0_15] : memref<97x5xf32, #tpu.memory_space<vmem>>, vector<32x5xf32>
    %cst_16 = arith.constant dense<0.000000e+00> : vector<2x5xf32>
    %27 = tpu.matmul %24, %26, %cst_16 {dimension_numbers = #tpu.dot_dimension_numbers<[1], [0], [0], [1], [0, 0, 1, 1], [], []>} : vector<2x32xf32>, vector<32x5xf32>, vector<2x5xf32> -> vector<2x5xf32>
    %c32_17 = arith.constant 32 : index
    %c0_18 = arith.constant 0 : index
    %28 = vector.load %arg2[%c32_17, %c0_18] : memref<97x5xf32, #tpu.memory_space<vmem>>, vector<64x5xf32>
    %cst_19 = arith.constant dense<0.000000e+00> : vector<2x5xf32>
    %29 = tpu.matmul %25, %28, %cst_19 {dimension_numbers = #tpu.dot_dimension_numbers<[1], [0], [0], [1], [0, 0, 1, 1], [], []>} : vector<2x64xf32>, vector<64x5xf32>, vector<2x5xf32> -> vector<2x5xf32>
    %30 = arith.addf %27, %29 : vector<2x5xf32>
    %c96 = arith.constant 96 : index
    %c0_20 = arith.constant 0 : index
    %31 = vector.load %arg2[%c96, %c0_20] : memref<97x5xf32, #tpu.memory_space<vmem>>, vector<1x5xf32>
    %32 = vector.broadcast %31 : vector<1x5xf32> to vector<2x5xf32>
    %33 = arith.addf %30, %32 : vector<2x5xf32>
    %c0_21 = arith.constant 0 : index
    %c0_22 = arith.constant 0 : index
    %34 = vector.load %arg3[%c0_21, %c0_22] : memref<2x5xf32, #tpu.memory_space<vmem>>, vector<2x5xf32>
    tpu.vector_store %arg3[%c0_21, %c0_22], %33 {strides = array<i32>} : memref<2x5xf32, #tpu.memory_space<vmem>>, vector<2x5xf32>,
    return
  }
}

</mosaic_0001>

<bundles_post_ra>
// kernel: _forward.1
= control target key start
LH: loop header
LB: loop body
LE: loop exit
PB: predicated region body
PF: predicated region fallthrough
CT: control target
= control target key end

     0   :  { %vm21_vm0 = vcmask 261120   ;;  %s513_s0 = inlined_call_operand.vmem [shape: f32[16,32], index: 0, kind: input, shape index: {}]   ;;  %s514_s1 = inlined_call_operand.vmem [shape: f32[82,64], index: 1, kind: input, shape index: {}]   ;;  %s515_s2 = inlined_call_operand.vmem [shape: f32[97,5], index: 2, kind: input, shape index: {}]   ;;  %s516_s3 = inlined_call_operand.hbm [shape: f32[2,5], index: 3, kind: output, shape index: {}]  }
   0x1   :  { %v20_v0 = vld [vmem:[%s514_s1 + $0x18] sm:$0xff]  ;;  %v19_v1 = vld [vmem:[%s514_s1 + $0x10] sm:$0xff]  ;;  %v414_v2 = vld [vmem:[%s513_s0 + $0x8] sm:$0xff] }
   0x2   :  { %40 = vmatpush.msra.mxu0 %v20_v0  ;;  %v18_v3 = vld [vmem:[%s514_s1 + $0x8] sm:$0xff]  ;;  %329 = vmatpush.xpose.msk.msra.mxu1 %vm21_vm0, %v414_v2 }
   0x3   :  { %8 = vsyncpa [#allocation3], 0  ;;  %v17_v4 = vld [vmem:[%s514_s1] sm:$0xff]  ;;  %s383_s24 = smov 96   ;;  %vm82_vm1 = vcmask 130048   ;;  %v52_v16 = vld [vmem:[%s514_s1 + $0x48] sm:$0xff] }
   0x4   :  { %41 = vmatpush.msra.mxu0 %v19_v1  ;;  %v427_v5 = vld [vmem:[%s513_s0] sm:$0xff]  ;;  %v171_v30 = vld [vmem:[%s514_s1 + $0x38] sm:$0xff]  ;;  %v170_v31 = vld [vmem:[%s514_s1 + $0x30] sm:$0xff]  ;;  %vm259_vm10 = vcmask 523264   ;;  %s384_s8 = smov [#allocation2]   ;;  %s318_s12 = sshll.u32 %s516_s3, 4  ;;  %s319_s12 = int_to_ptr.hbm [resolvable:$true] %s318_s12 }
   0x5   :  { %v51_v12 = vld [vmem:[%s514_s1 + $0x40] sm:$0xff]  ;;  %190 = vmatpush.msra.mxu3 %v171_v30  ;;  %v169_v56 = vld [vmem:[%s514_s1 + $0x28] sm:$0xff]  ;;  %v203_v62 = vld [vmem:[%s514_s1 + $0x50] sm:$0x3]  ;;  %s316_s9 = sshll.u32 %s384_s8, 4  ;;  %vm309_vm11 = vcmask 33792   ;;  %s317_s9 = int_to_ptr.vmem [resolvable:$true] %s316_s9 }
   0x6   :  { %42 = vmatpush.msra.mxu0 %v18_v3  ;;  %330 = vmatpush.xpose.msk.msra.mxu1 %vm21_vm0, %v427_v5  ;;  %v168_v57 = vld [vmem:[%s514_s1 + $0x20] sm:$0xff]  ;;  %v250_v63 = vld [vmem:[%s515_s2 + $0x18] sm:$0xff]  ;;  %v249_v0 = vld [vmem:[%s515_s2 + $0x10] sm:$0xff] }
   0x7   :  { %191 = vmatpush.msra.mxu3 %v170_v31  ;;  %v258_v1 = vld [vmem:[%s515_s2 + $0x58] sm:$0xff]  ;;  %v248_v3 = vld [vmem:[%s515_s2 + $0x8] sm:$0xff] }
   0x8   :  { %43 = vmatpush.msra.mxu0 %v17_v4  ;;  %v256_v4 = vld [vmem:[%s515_s2 + $0x48] sm:$0xff] }
   0x9   :  { %327 = vmatmul.msk.f32.vlgmr.msra.gmra.mxu0 %vm21_vm0, %v427_v5  ;;  %192 = vmatpush.msra.mxu3 %v169_v56 }
   0xa   :  { %271 = vmatpush.msrb.mxu1 %v258_v1 }
   0xb   :  { %193 = vmatpush.msra.mxu3 %v168_v57 }
   0xd   :  { %298 = vmatpush.msrb.mxu3 %v250_v63 }
   0xf   :  { %299 = vmatpush.msrb.mxu3 %v249_v0 }
  0x11   :  { %328 = vmatmul.msk.f32.gmra.mxu0 %vm21_vm0, %v414_v2  ;;  %300 = vmatpush.msrb.mxu3 %v248_v3 }
  0x86   :  { %v45_v6 = vpop.f32.mrf.mxu0 }
  0x87   :  { %331 = vmatmul.msk.f32.vlgmr.msra.gmra.mxu1 %vm21_vm0, %v45_v6 }
  0x8e   :  { %v48_v7 = vpop.f32.mrf.mxu0 }
  0x8f   :  { %332 = vmatmul.msk.f32.gmra.mxu1 %vm21_vm0, %v48_v7  ;;  %v343_v8 = vpack.i.bf16 %v45_v6, %v48_v7  ;;  %v247_v6 = vld [vmem:[%s515_s2] sm:$0xff]  ;;  %v254_v7 = vld [vmem:[%s515_s2 + $0x38] sm:$0xff] }
  0x90   :  { %301 = vmatpush.msrb.mxu3 %v247_v6 }
  0x91   :  { %344 = vrot.lane.b32.xlu2 %v343_v8, %s383_s24 }
  0xeb   :  { %v345_v9 = vpop.permute.xlu2 %344 }
  0xec   :  { %v346_v10 = vunpack.i.l.bf16 %v345_v9  ;;  %v347_v11 = vunpack.i.h.bf16 %v345_v9 }
  0xee   :  { %157 = vmatpush.msra.mxu2 %v346_v10 }
  0xf0   :  { %158 = vmatpush.msra.mxu2 %v347_v11 }
 0x104   :  { %v76_v13 = vpop.f32.mrf.mxu1 }
 0x105   :  { %v77_v14 = vadd.f32 %v76_v13, %v51_v12  ;;  %v253_v12 = vld [vmem:[%s515_s2 + $0x30] sm:$0xff]  ;;  %v252_v13 = vld [vmem:[%s515_s2 + $0x28] sm:$0xff] }
 0x107   :  { %v83_v15 = vsel %vm82_vm1, %v77_v14, -inf }
 0x108   :  { %84 = vmax.xlane.f32.xlu0 %v83_v15 }
 0x10c   :  { %v79_v17 = vpop.f32.mrf.mxu1 }
 0x10d   :  { %v80_v18 = vadd.f32 %v79_v17, %v52_v16 }
 0x10f   :  { %v86_v19 = vsel %vm82_vm1, %v80_v18, -inf }
 0x110   :  { %87 = vmax.xlane.f32.xlu0 %v86_v19 }
 0x17b   :  { %v85_v20 = vpop.xlane.xlu0 %84 }
 0x17c   :  { %v89_v21 = vsub.f32 %v77_v14, %v85_v20  ;;  %v251_v14 = vld [vmem:[%s515_s2 + $0x20] sm:$0xff] }
 0x17e   :  { %v91_v22 = vmul.f32 1.442695, %v89_v21 }
 0x180   :  { %349 = vpow2.f32 %v91_v22 }
 0x183   :  { %v88_v23 = vpop.xlane.xlu0 %87 }
 0x184   :  { %v90_v24 = vsub.f32 %v80_v18, %v88_v23  ;;  %v348_v18 = vld [vmem:[%s515_s2 + $0x60] ss:$0 sm:$0xff] }
 0x186   :  { %v350_v25 = vpop.eup %349  ;;  %v93_v26 = vmul.f32 1.442695, %v90_v24 }
 0x187   :  { %v95_v27 = vsel %vm82_vm1, %v350_v25, 0.0 }
 0x188   :  { %351 = vpow2.f32 %v93_v26  ;;  %96 = vadd.xlane.f32.xlu1 %v95_v27 }
 0x18e   :  { %v352_v28 = vpop.eup %351 }
 0x18f   :  { %v98_v29 = vsel %vm82_vm1, %v352_v28, 0.0 }
 0x190   :  { %99 = vadd.xlane.f32.xlu1 %v98_v29 }
 0x1fb   :  { %v97_v32 = vpop.xlane.xlu1 %96 }
 0x1fc   :  { %353 = vrcp.f32 %v97_v32  ;;  %v112_v37 = vand.u32 2147483648, %v97_v32  ;;  %v110_v39 = vand.u32 2147483647, %v97_v32  ;;  %vm106_vm3 = vweird.f32 %v97_v32 }
 0x1fe   :  { %v113_v42 = vor.u32 1.1754944e-38, %v112_v37  ;;  %vm111_vm5 = vcmp.eq.f32.partialorder %v110_v39, 8.507059e+37 }
 0x202   :  { %v354_v33 = vpop.eup %353 }
 0x203   :  { %v102_v34 = vmul.f32 %v354_v33, %v97_v32  ;;  %v100_v35 = vpop.xlane.xlu1 %99  ;;  %vm107_vm2 = vweird.f32 %v354_v33 }
 0x204   :  { %355 = vrcp.f32 %v100_v35  ;;  %vm108_vm4 = vmor %vm106_vm3, %vm107_vm2  ;;  %v127_v48 = vand.u32 2147483648, %v100_v35  ;;  %v125_v50 = vand.u32 2147483647, %v100_v35  ;;  %vm121_vm7 = vweird.f32 %v100_v35 }
 0x205   :  { %v103_v36 = vsub.f32 1.0, %v102_v34 }
 0x206   :  { %v128_v52 = vor.u32 1.1754944e-38, %v127_v48  ;;  %vm126_vm9 = vcmp.eq.f32.partialorder %v125_v50, 8.507059e+37 }
 0x207   :  { %v104_v38 = vmul.f32 %v354_v33, %v103_v36 }
 0x209   :  { %v105_v40 = vadd.f32 %v354_v33, %v104_v38 }
 0x20a   :  { %v356_v41 = vpop.eup %355 }
 0x20b   :  { %v117_v43 = vmul.f32 %v356_v41, %v100_v35  ;;  %v109_v44 = vsel %vm108_vm4, %v354_v33, %v105_v40  ;;  %vm122_vm6 = vweird.f32 %v356_v41 }
 0x20c   :  { %v114_v45 = vsel %vm111_vm5, %v113_v42, %v109_v44  ;;  %vm123_vm8 = vmor %vm121_vm7, %vm122_vm6 }
 0x20d   :  { %v118_v46 = vsub.f32 1.0, %v117_v43  ;;  %v115_v47 = vmul.f32 %v350_v25, %v114_v45 }
 0x20f   :  { %v119_v49 = vmul.f32 %v356_v41, %v118_v46  ;;  %333 = vmatmul.msk.f32.vlgmr.msra.gmra.mxu2 %vm82_vm1, %v115_v47 }
 0x211   :  { %v120_v51 = vadd.f32 %v356_v41, %v119_v49 }
 0x213   :  { %v124_v53 = vsel %vm123_vm8, %v356_v41, %v120_v51 }
 0x214   :  { %v129_v54 = vsel %vm126_vm9, %v128_v52, %v124_v53 }
 0x215   :  { %v130_v55 = vmul.f32 %v352_v28, %v129_v54 }
 0x217   :  { %334 = vmatmul.msk.f32.gmra.mxu2 %vm82_vm1, %v130_v55 }
 0x292   :  { %v160_v58 = vpop.f32.mrf.mxu2 }
 0x293   :  { %v166_v59 = vadd.f32 %v160_v58, %v427_v5  ;;  %v255_v5 = vld [vmem:[%s515_s2 + $0x40] sm:$0xff] }
 0x295   :  { %335 = vmatmul.msk.f32.vlgmr.msra.gmra.mxu3 %vm21_vm0, %v166_v59 }
 0x29a   :  { %v163_v60 = vpop.f32.mrf.mxu2 }
 0x29b   :  { %v167_v61 = vadd.f32 %v163_v60, %v414_v2  ;;  %v257_v2 = vld [vmem:[%s515_s2 + $0x50] sm:$0xff] }
 0x29c   :  { %272 = vmatpush.msrb.mxu1 %v257_v2 }
 0x29d   :  { %336 = vmatmul.msk.f32.gmra.mxu3 %vm21_vm0, %v167_v61  ;;  %221 = vmatpush.msrb.mxu2 %v167_v61 }
 0x29e   :  { %273 = vmatpush.msrb.mxu1 %v256_v4 }
 0x29f   :  { %222 = vmatpush.msrb.mxu2 %v166_v59 }
 0x2a0   :  { %337 = vmatmul.msk.f32.vlgmr.msrb.gmra.mxu2 %vm82_vm1, %v203_v62  ;;  %274 = vmatpush.msrb.mxu1 %v255_v5 }
 0x2a2   :  { %275 = vmatpush.msrb.mxu1 %v254_v7 }
 0x2a4   :  { %276 = vmatpush.msrb.mxu1 %v253_v12 }
 0x2a6   :  { %277 = vmatpush.msrb.mxu1 %v252_v13 }
 0x2a8   :  { %278 = vmatpush.msrb.mxu1 %v251_v14 }
 0x318   :  { %v195_v8 = vpop.f32.mrf.mxu3 }
 0x319   :  { %v201_v11 = vmax.f32 %v195_v8, 0.0 }
 0x320   :  { %v198_v9 = vpop.f32.mrf.mxu3 }
 0x321   :  { %v202_v10 = vmax.f32 %v198_v9, 0.0 }
 0x323   :  { %241 = vmatpush.msrb.mxu0 %v202_v10  ;;  %v224_v15 = vpop.f32.mrf.mxu2 }
 0x324   :  { %340 = vmatmul.msk.f32.vlgmr.msrb.gmra.mxu3 %vm21_vm0, %v224_v15 }
 0x325   :  { %242 = vmatpush.msrb.mxu0 %v201_v11 }
 0x326   :  { %338 = vmatmul.msk.f32.vlgmr.msrb.gmra.mxu0 %vm82_vm1, %v203_v62 }
 0x3a3   :  { %v244_v16 = vpop.f32.mrf.mxu0 }
 0x3a4   :  { %339 = vmatmul.msk.f32.vlgmr.msrb.gmra.mxu1 %vm259_vm10, %v244_v16 }
 0x3a7   :  { %v303_v17 = vpop.f32.mrf.mxu3 }
 0x421   :  { %v280_v19 = vpop.f32.mrf.mxu1 }
 0x422   :  { %v304_v20 = vadd.f32 %v303_v17, %v280_v19 }
 0x424   :  { %v308_v21 = vadd.f32 %v348_v18, %v304_v20 }
 0x426   :  { %310 = vst.msk [vmem:[#allocation2] sm:$0x3] %vm309_vm11, %v308_v21 }
 0x427   :  { %321 = dma.vmem_to_hbm [thread:$0]  %s317_s9, 32, %s319_s12, [#allocation3]  }
 0x428   :  { %381 = dma.done.wait [#allocation3], 32  }
 0x429   :  { %382 = vsyncadd [#allocation3], 4294967264 }
 0x42a   :  { %326 = vsyncpa [#allocation3], 1 }

</bundles_post_ra>
